<compile_context>
chip_gen: v7x
topology: tpu7x:2x2x1
jax: 0.10.0
libtpu: 0.0.40
codegen_flags: <defaults>
</compile_context>

<pallas_src>
import math

import jax
import jax.numpy as jnp
from jax.experimental import pallas as pl
from jax.experimental.pallas import tpu as pltpu


def _round_up(x, m):
    return (x + m - 1) // m * m


def _pick_tile(dim, preferred, align):
    """Tile for `dim`: multiple of `align`, <= preferred, splitting the dim into
    ~equal blocks (no collapse to `align`-wide tiles for awkward sizes)."""
    dim_aligned = _round_up(dim, align)
    if dim_aligned <= preferred:
        return dim_aligned
    n_blocks = -(-dim_aligned // preferred)                # ceil
    return _round_up(-(-dim_aligned // n_blocks), align)   # ceil then align


def _hw_tile_config(compute_dtype):
    """Generation-aware tile preferences + scoped-VMEM limit."""
    itemsize = jnp.dtype(compute_dtype).itemsize
    try:
        info = pltpu.get_tpu_info()
        vmem_cap = int(getattr(info, "vmem_capacity_bytes", 64 << 20))
    except Exception:
        vmem_cap = 64 << 20                 # conservative: v7x per-core VMEM
    big_vmem = vmem_cap >= (128 << 20)      # v5e / v6e
    vmem_limit = min(vmem_cap // 2, 64 << 20)
    tm_pref = 512
    if itemsize <= 2:                       # bf16 / fp8 MXU operands
        tn_pref = 1024
        tk_pref = 2048 if big_vmem else 1024
        align_m = 32 // itemsize            # sublane packing (16 for bf16)
    else:                                   # f32 operands
        tn_pref = 512
        tk_pref = 1024
        align_m = 8
    return tm_pref, tn_pref, tk_pref, align_m, vmem_limit


# ---------------- kernels ----------------
# f32-output variants: the output block is resident across the k axis, so we
# accumulate directly into it (no scratch, no finalize copy).

def _mm_kernel_f32(x_ref, w_ref, o_ref):
    @pl.when(pl.program_id(2) == 0)
    def _init():
        o_ref[...] = jnp.zeros_like(o_ref)

    o_ref[...] += jnp.dot(x_ref[...], w_ref[...],
                          preferred_element_type=jnp.float32)


def _mm_bias_kernel_f32(x_ref, w_ref, b_ref, o_ref):
    @pl.when(pl.program_id(2) == 0)
    def _init():
        o_ref[...] = jnp.broadcast_to(b_ref[...], o_ref.shape)

    o_ref[...] += jnp.dot(x_ref[...], w_ref[...],
                          preferred_element_type=jnp.float32)


# scratch-accumulator variants for non-f32 output dtypes.

def _mm_kernel_acc(x_ref, w_ref, o_ref, acc_ref):
    k = pl.program_id(2)

    @pl.when(k == 0)
    def _init():
        acc_ref[...] = jnp.zeros_like(acc_ref)

    acc_ref[...] += jnp.dot(x_ref[...], w_ref[...],
                            preferred_element_type=jnp.float32)

    @pl.when(k == pl.num_programs(2) - 1)
    def _fin():
        o_ref[...] = acc_ref[...].astype(o_ref.dtype)


def _mm_bias_kernel_acc(x_ref, w_ref, b_ref, o_ref, acc_ref):
    k = pl.program_id(2)

    @pl.when(k == 0)
    def _init():
        acc_ref[...] = jnp.broadcast_to(b_ref[...], acc_ref.shape)

    acc_ref[...] += jnp.dot(x_ref[...], w_ref[...],
                            preferred_element_type=jnp.float32)

    @pl.when(k == pl.num_programs(2) - 1)
    def _fin():
        o_ref[...] = acc_ref[...].astype(o_ref.dtype)


# ---------------- host wrapper ----------------

def linear_forward(x, w_padded, b_padded, out_features, *, tn, tk,
                   tm_pref=512, align_m=8, vmem_limit_bytes=32 << 20,
                   compute_dtype=jnp.bfloat16):
    """y = x @ w (+ b).

    w_padded: (K_pad, N_pad) weight already transposed, cast and padded at init.
    b_padded: (1, N_pad) float32 or None.
    """
    orig_shape = x.shape
    K = orig_shape[-1]
    K_pad, N_pad = w_padded.shape
    assert K <= K_pad and out_features <= N_pad, "feature-size mismatch"
    out_dtype = x.dtype

    x2 = x.reshape(-1, K)
    M = x2.shape[0]
    tm = _pick_tile(M, tm_pref, align_m)
    M_pad = _round_up(M, tm)

    # Per-call work on x only: pad rows / K (matching the pre-padded weight)
    # and cast activations to the MXU operand dtype once, outside the kernel.
    if (M_pad, K_pad) != (M, K):
        x2 = jnp.pad(x2, ((0, M_pad - M), (0, K_pad - K)))
    x2 = x2.astype(compute_dtype)

    grid = (M_pad // tm, N_pad // tn, K_pad // tk)

    in_specs = [
        pl.BlockSpec((tm, tk), lambda i, j, k: (i, k)),
        pl.BlockSpec((tk, tn), lambda i, j, k: (k, j)),
    ]
    inputs = [x2, w_padded]
    if b_padded is not None:
        in_specs.append(pl.BlockSpec((1, tn), lambda i, j, k: (0, j)))
        inputs.append(b_padded)

    if out_dtype == jnp.float32:
        kernel = _mm_bias_kernel_f32 if b_padded is not None else _mm_kernel_f32
        scratch_shapes = []
    else:
        kernel = _mm_bias_kernel_acc if b_padded is not None else _mm_kernel_acc
        scratch_shapes = [pltpu.VMEM((tm, tn), jnp.float32)]

    # HBM traffic with re-reads: W read grid_m times, x read grid_n times.
    cost = pl.CostEstimate(
        flops=2 * M_pad * N_pad * K_pad,
        transcendentals=0,
        bytes_accessed=(x2.dtype.itemsize * M_pad * K_pad * grid[1]
                        + w_padded.dtype.itemsize * K_pad * N_pad * grid[0]
                        + jnp.dtype(out_dtype).itemsize * M_pad * N_pad),
    )

    out = pl.pallas_call(
        kernel,
        out_shape=jax.ShapeDtypeStruct((M_pad, N_pad), out_dtype),
        grid_spec=pltpu.PrefetchScalarGridSpec(
            num_scalar_prefetch=0,
            grid=grid,
            in_specs=in_specs,
            out_specs=pl.BlockSpec((tm, tn), lambda i, j, k: (i, j)),
            scratch_shapes=scratch_shapes,
        ),
        compiler_params=pltpu.CompilerParams(
            dimension_semantics=("parallel", "parallel", "arbitrary"),
            vmem_limit_bytes=vmem_limit_bytes,
        ),
        cost_estimate=cost,
    )(*inputs)

    if (M_pad, N_pad) != (M, out_features):
        out = out[:M, :out_features]
    return out.reshape(orig_shape[:-1] + (out_features,))


class Linear:
    """JAX/Pallas port of slim.linear.Linear.

    Forward semantics match nn.Linear(insize, outsize, bias=bias):
        y = x @ W.T (+ b if bias=True), W shape = (outsize, insize).

    MXU operands are stored/computed in `compute_dtype` (bf16 by default — the
    native MXU dtype on v5e/v6e/v7x, half the weight DMA); accumulation stays
    float32 so outputs match the f32 reference to <1%. Pass
    compute_dtype=jnp.float32 for exact f32 matmul.
    """

    def __init__(self, insize, outsize, bias=False, key=None,
                 compute_dtype=jnp.bfloat16,
                 tm_pref=None, tn_pref=None, tk_pref=None):
        self.in_features = insize
        self.out_features = outsize
        self.use_bias = bias
        self.compute_dtype = jnp.dtype(compute_dtype)

        if key is None:
            key = jax.random.PRNGKey(0)
        wkey, bkey = jax.random.split(key)

        # Generation-aware tile config + scoped-VMEM limit.
        d_tm, d_tn, d_tk, self._align_m, self._vmem_limit = _hw_tile_config(
            self.compute_dtype)
        self._tm_pref = tm_pref or d_tm
        tn_pref = tn_pref or d_tn
        tk_pref = tk_pref or d_tk
        self._tn = _pick_tile(outsize, tn_pref, 128)
        self._tk = _pick_tile(insize, tk_pref, 128)
        n_pad = _round_up(outsize, self._tn)
        k_pad = _round_up(insize, self._tk)

        # nn.Linear default init: W (out, in) ~ U(-1/sqrt(in), 1/sqrt(in)).
        bound = 1.0 / math.sqrt(insize)
        w = jax.random.uniform(wkey, (outsize, insize), dtype=jnp.float32,
                               minval=-bound, maxval=bound)
        # Transpose + cast + pad ONCE at init; only this padded copy is kept
        # (no duplicate (out, in) f32 copy in HBM).
        w_t = w.T.astype(self.compute_dtype)
        self.weight_t = jnp.pad(w_t, ((0, k_pad - insize), (0, n_pad - outsize)))

        if bias:
            self.bias = jax.random.uniform(bkey, (outsize,), dtype=jnp.float32,
                                           minval=-bound, maxval=bound)
            self._bias_padded = jnp.pad(self.bias.reshape(1, outsize),
                                        ((0, 0), (0, n_pad - outsize)))
        else:
            self.bias = None
            self._bias_padded = None

    def effective_W(self):
        # (in, out) view of the actual (compute-dtype) parameter, upcast to f32.
        return self.weight_t[: self.in_features, : self.out_features].astype(jnp.float32)

    def reg_error(self):
        return jnp.array(0.0, dtype=jnp.float32)

    def __call__(self, x):
        return linear_forward(
            x, self.weight_t, self._bias_padded, self.out_features,
            tn=self._tn, tk=self._tk, tm_pref=self._tm_pref,
            align_m=self._align_m, vmem_limit_bytes=self._vmem_limit,
            compute_dtype=self.compute_dtype,
        )


if __name__ == "__main__":
    key = jax.random.PRNGKey(0)
    k1, k2, k3, km1, km2, km3 = jax.random.split(key, 6)

    def ref_forward(layer, x):
        # Reference using the same effective (compute-dtype) parameters,
        # full-precision f32 accumulation.
        xr = x.astype(layer.compute_dtype).astype(jnp.float32)
        y = jnp.einsum("...k,kn->...n", xr, layer.effective_W(),
                       precision=jax.lax.Precision.HIGHEST)
        if layer.bias is not None:
            y = y + layer.bias
        return y

    # Case 1: small 3-D input, unaligned feature dims, with bias (padding path).
    x1 = jax.random.normal(k1, (2, 8, 32), dtype=jnp.float32)
    l1 = Linear(32, 48, bias=True, key=km1)
    y1 = jax.block_until_ready(l1(x1))
    assert y1.shape == (2, 8, 48)
    assert jnp.allclose(y1, ref_forward(l1, x1), atol=1e-2, rtol=1e-2)

    # Case 2: 2-D input, no bias, lane-aligned dims (bf16 operands, f32 acc).
    x2 = jax.random.normal(k2, (64, 256), dtype=jnp.float32)
    l2 = Linear(256, 128, bias=False, key=km2)
    y2 = jax.block_until_ready(l2(x2))
    assert y2.shape == (64, 128)
    assert jnp.allclose(y2, ref_forward(l2, x2), atol=1e-2, rtol=1e-2)

    # Case 3: force a multi-step (i, j, k) grid with small tiles to exercise the
    # resident-output K accumulation, with exact f32 MXU operands.
    x3 = jax.random.normal(k3, (96, 384), dtype=jnp.float32)
    l3 = Linear(384, 256, bias=True, key=km3, compute_dtype=jnp.float32,
                tm_pref=64, tn_pref=128, tk_pref=128)
    y3 = jax.block_until_ready(l3(x3))
    assert y3.shape == (96, 256)
    assert jnp.allclose(y3, ref_forward(l3, x3), atol=1e-3, rtol=1e-3)

    print("KERNEL_OK")
</pallas_src>

<mosaic_0001>
module attributes {stable_mosaic.version = 11 : i64} {
  func.func @_mm_bias_kernel_f32(%arg0: i32, %arg1: i32, %arg2: i32, %arg3: memref<16x128xbf16, #tpu.memory_space<vmem>>, %arg4: memref<128x128xbf16, #tpu.memory_space<vmem>>, %arg5: memref<1x128xf32, #tpu.memory_space<vmem>>, %arg6: memref<16x128xf32, #tpu.memory_space<vmem>>) attributes {dimension_semantics = [#tpu.dimension_semantics<parallel>, #tpu.dimension_semantics<parallel>, #tpu.dimension_semantics<arbitrary>], iteration_bounds = array<i64: 1, 1, 1>, scalar_prefetch = 0 : i64, scratch_operands = 0 : i64, tpu.core_type = #tpu.core_type<tc>, window_params = [{transform_indices = @transform_0, window_bounds = array<i64: 16, 128>}, {transform_indices = @transform_1, window_bounds = array<i64: 128, 128>}, {transform_indices = @transform_2, window_bounds = array<i64: 1, 128>}, {transform_indices = @transform_3, window_bounds = array<i64: 16, 128>}]} {
    %c0_i32 = arith.constant 0 : i32
    %0 = arith.cmpi eq, %arg2, %c0_i32 : i32
    %1 = arith.extui %0 : i1 to i32
    %c0_i32_0 = arith.constant 0 : i32
    %2 = arith.cmpi ne, %1, %c0_i32_0 : i32
    scf.if %2 {
      %c0_8 = arith.constant 0 : index
      %c0_9 = arith.constant 0 : index
      %9 = vector.load %arg5[%c0_8, %c0_9] : memref<1x128xf32, #tpu.memory_space<vmem>>, vector<1x128xf32>
      %10 = vector.shape_cast %9 : vector<1x128xf32> to vector<1x128xf32>
      %11 = vector.broadcast %10 : vector<1x128xf32> to vector<16x128xf32>
      %c0_10 = arith.constant 0 : index
      %c0_11 = arith.constant 0 : index
      %12 = vector.load %arg6[%c0_10, %c0_11] : memref<16x128xf32, #tpu.memory_space<vmem>>, vector<16x128xf32>
      tpu.vector_store %arg6[%c0_10, %c0_11], %11 {strides = array<i32>} : memref<16x128xf32, #tpu.memory_space<vmem>>, vector<16x128xf32>,
    } else {
    }
    %c0 = arith.constant 0 : index
    %c0_1 = arith.constant 0 : index
    %3 = vector.load %arg6[%c0, %c0_1] : memref<16x128xf32, #tpu.memory_space<vmem>>, vector<16x128xf32>
    %c0_2 = arith.constant 0 : index
    %c0_3 = arith.constant 0 : index
    %4 = vector.load %arg3[%c0_2, %c0_3] : memref<16x128xbf16, #tpu.memory_space<vmem>>, vector<16x128xbf16>
    %c0_4 = arith.constant 0 : index
    %c0_5 = arith.constant 0 : index
    %5 = vector.load %arg4[%c0_4, %c0_5] : memref<128x128xbf16, #tpu.memory_space<vmem>>, vector<128x128xbf16>
    %cst = arith.constant dense<0.000000e+00> : vector<16x128xf32>
    %6 = tpu.matmul %4, %5, %cst {dimension_numbers = #tpu.dot_dimension_numbers<[1], [0], [0], [1], [0, 0, 1, 1], [], []>} : vector<16x128xbf16>, vector<128x128xbf16>, vector<16x128xf32> -> vector<16x128xf32>
    %7 = arith.addf %3, %6 : vector<16x128xf32>
    %c0_6 = arith.constant 0 : index
    %c0_7 = arith.constant 0 : index
    %8 = vector.load %arg6[%c0_6, %c0_7] : memref<16x128xf32, #tpu.memory_space<vmem>>, vector<16x128xf32>
    tpu.vector_store %arg6[%c0_6, %c0_7], %7 {strides = array<i32>} : memref<16x128xf32, #tpu.memory_space<vmem>>, vector<16x128xf32>,
    return
  }
  func.func @transform_0(%arg0: i32, %arg1: i32, %arg2: i32) -> (i32, i32) {
    %c0_i32 = arith.constant 0 : i32
    return %arg0, %arg2 : i32, i32
  }
  func.func @transform_1(%arg0: i32, %arg1: i32, %arg2: i32) -> (i32, i32) {
    %c0_i32 = arith.constant 0 : i32
    return %arg2, %arg1 : i32, i32
  }
  func.func @transform_2(%arg0: i32, %arg1: i32, %arg2: i32) -> (i32, i32) {
    %c0_i32 = arith.constant 0 : i32
    %c0_i32_0 = arith.constant 0 : i32
    return %c0_i32, %arg1 : i32, i32
  }
  func.func @transform_3(%arg0: i32, %arg1: i32, %arg2: i32) -> (i32, i32) {
    %c0_i32 = arith.constant 0 : i32
    return %arg0, %arg1 : i32, i32
  }
}

</mosaic_0001>

<bundles_post_ra>
// kernel: tpu_custom_call.1
= control target key start
LH: loop header
LB: loop body
LE: loop exit
PB: predicated region body
PF: predicated region fallthrough
CT: control target
= control target key end

     0   :  { %8 = vsyncpa [#allocation3], 0  ;;  %s391_s0 = inlined_call_operand.hbm [shape: bf16[16,128], index: 0, kind: input, shape index: {}]   ;;  %s392_s1 = inlined_call_operand.hbm [shape: bf16[128,128], index: 1, kind: input, shape index: {}]   ;;  %s393_s2 = inlined_call_operand.vmem [shape: f32[1,128], index: 2, kind: input, shape index: {}]   ;;  %s394_s3 = inlined_call_operand.hbm [shape: f32[16,128], index: 3, kind: output, shape index: {}]  }
   0x1   :  { %9 = vsyncpa [#allocation6], 0 }
   0x2   :  { %10 = vsyncpa [#allocation4], 0  ;;  %s323_s12 = smov [#allocation2]   ;;  %s251_s16 = scalar_lea.hbm %s391_s0, 128 }
   0x3   :  { %s16_s13 = sshll.u32 %s323_s12, 4  ;;  %p252_p0 = scmp.ne.s32.totalorder %s391_s0, %s251_s16  ;;  %s17_s13 = int_to_ptr.vmem [resolvable:$true] %s16_s13 }
   0x4   :  { %p255_p1 = scmp.lt.u32.totalorder %s251_s16, %s391_s0 }
   0x6   :  { %p257_p2 = pnand %p255_p1, %p252_p0 }
   0x8   :  { %260 = shalt.err (!%p257_p2)
}
   0x9   :  { %s261_s21 = scalar_lea.vmem %s17_s13, 128  ;;  %p266_p4 = scmp.lt.s32.totalorder %s17_s13, %s17_s13 }
   0xa   :  { %p262_p3 = scmp.ne.s32.totalorder %s17_s13, %s261_s21  ;;  %p267_p5 = scmp.lt.s32.totalorder %s261_s21, %s261_s21 }
   0xc   :  { %p268_p6 = por %p267_p5, %p266_p4 }
   0xe   :  { %p269_p7 = pnand %p268_p6, %p262_p3 }
  0x10   :  { %272 = shalt.err (!%p269_p7)
}
  0x11   :  { %s324_s22 = smov 64   ;;  %s325_s23 = smov 4  }
  0x12   :  { %22 = dma.hbm_to_vmem [thread:$0]  %s391_s0, 128, %s17_s13, [#allocation3], %s324_s22, %s324_s22, %s325_s23  }
  0x13   :  { %s326_s26 = smov [#allocation5]   ;;  %s273_s30 = scalar_lea.hbm %s392_s1, 1024 }
  0x14   :  { %s28_s27 = sshll.u32 %s326_s26, 4  ;;  %p274_p8 = scmp.ne.s32.totalorder %s392_s1, %s273_s30  ;;  %s29_s27 = int_to_ptr.vmem [resolvable:$true] %s28_s27 }
  0x15   :  { %p277_p9 = scmp.lt.u32.totalorder %s273_s30, %s392_s1 }
  0x17   :  { %p279_p10 = pnand %p277_p9, %p274_p8 }
  0x19   :  { %282 = shalt.err (!%p279_p10)
}
  0x1a   :  { %s283_s8 = scalar_lea.vmem %s29_s27, 1024  ;;  %p288_p12 = scmp.lt.s32.totalorder %s29_s27, %s29_s27 }
  0x1b   :  { %p284_p11 = scmp.ne.s32.totalorder %s29_s27, %s283_s8  ;;  %p289_p13 = scmp.lt.s32.totalorder %s283_s8, %s283_s8 }
  0x1d   :  { %p290_p0 = por %p289_p13, %p288_p12 }
  0x1f   :  { %p291_p1 = pnand %p290_p0, %p284_p11 }
  0x21   :  { %294 = shalt.err (!%p291_p1)
}
  0x22   :  { %34 = dma.hbm_to_vmem [thread:$0]  %s392_s1, 1024, %s29_s27, [#allocation6], %s324_s22, %s324_s22, %s325_s23  }
  0x23   :  { %317 = dma.done.wait [#allocation3], 128  }
  0x24   :  { %318 = vsyncadd [#allocation3], 4294967168 }
  0x25   :  { %319 = dma.done.wait [#allocation6], 1024  }
  0x26   :  { %320 = vsyncadd [#allocation6], 4294966272  ;;  %v327_v0 = vmov 0.0   ;;  %vm328_vm0 = vmmov 0   ;;  %v242_v1 = vld [vmem:[#allocation5] sm:$0xff]   ;;  %v243_v2 = vld [vmem:[#allocation5 + $0x8] sm:$0xff]  }
  0x27   :  { %213 = vmatprep.subr.bf16.mxu0 %v327_v0  ;;  %229 = vmatprep.mubr.msk.bf16.mxu0 %vm328_vm0, %v327_v0  ;;  %v244_v3 = vld [vmem:[#allocation5 + $0x10] sm:$0xff]   ;;  %v245_v4 = vld [vmem:[#allocation5 + $0x18] sm:$0xff]   ;;  %v246_v5 = vld [vmem:[#allocation5 + $0x20] sm:$0xff]   ;;  %s329_s11 = smov [#allocation7]  }
  0x28   :  { %214 = vmatpush3.bf16.msra.mxu0 %v242_v1  ;;  %v247_v6 = vld [vmem:[#allocation5 + $0x28] sm:$0xff]   ;;  %v248_v7 = vld [vmem:[#allocation5 + $0x30] sm:$0xff]   ;;  %v249_v8 = vld [vmem:[#allocation5 + $0x38] sm:$0xff]   ;;  %s181_s12 = sshll.u32 %s329_s11, 4  ;;  %s182_s12 = int_to_ptr.vmem [resolvable:$true] %s181_s12 }
  0x29   :  { %215 = vmatprep.subr.bf16.mxu0 %v327_v0  ;;  %v250_v9 = vld [vmem:[#allocation2] sm:$0xff]   ;;  %s295_s13 = scalar_lea.vmem %s182_s12, 256  ;;  %p300_p3 = scmp.lt.s32.totalorder %s182_s12, %s182_s12 }
  0x2a   :  { %v194_v10 = vld [vmem:[%s393_s2] ss:$0 sm:$0xff]  ;;  %p296_p2 = scmp.ne.s32.totalorder %s182_s12, %s295_s13  ;;  %p301_p4 = scmp.lt.s32.totalorder %s295_s13, %s295_s13 }
  0x2c   :  { %216 = vmatpush3.bf16.msra.mxu0 %v243_v2  ;;  %p302_p5 = por %p301_p4, %p300_p3 }
  0x2d   :  { %217 = vmatprep.subr.bf16.mxu0 %v327_v0 }
  0x2e   :  { %p303_p6 = pnand %p302_p5, %p296_p2 }
  0x30   :  { %218 = vmatpush3.bf16.msra.mxu0 %v244_v3 }
  0x31   :  { %219 = vmatprep.subr.bf16.mxu0 %v327_v0 }
  0x34   :  { %220 = vmatpush3.bf16.msra.mxu0 %v245_v4 }
  0x35   :  { %221 = vmatprep.subr.bf16.mxu0 %v327_v0 }
  0x38   :  { %222 = vmatpush3.bf16.msra.mxu0 %v246_v5 }
  0x39   :  { %223 = vmatprep.subr.bf16.mxu0 %v327_v0 }
  0x3c   :  { %224 = vmatpush3.bf16.msra.mxu0 %v247_v6 }
  0x3d   :  { %225 = vmatprep.subr.bf16.mxu0 %v327_v0 }
  0x40   :  { %226 = vmatpush3.bf16.msra.mxu0 %v248_v7 }
  0x41   :  { %227 = vmatprep.subr.bf16.mxu0 %v327_v0 }
  0x44   :  { %228 = vmatpush3.bf16.msra.mxu0 %v249_v8 }
  0x47   :  { %230 = vmatmul.mubr.bf16.vlgmr.msra.gmra.mrb[0].mxu0 %v250_v9 }
 0x11a   :  { %v165_v11 = vpop.f32.mrb[0].mxu0 }
 0x11b   :  { %v172_v12 = vadd.f32 %v194_v10, %v165_v11  ;;  %v231_v13 = vpop.f32.mrb[1].mxu0 }
 0x11c   :  { %v168_v14 = vpop.f32.mrb[2].mxu0 }
 0x11d   :  { %174 = vst [vmem:[#allocation7] sm:$0xff] %v172_v12  ;;  %v173_v15 = vadd.f32 %v194_v10, %v168_v14  ;;  %v232_v16 = vpop.f32.mrb[3].mxu0 }
 0x11f   :  { %175 = vst [vmem:[#allocation7 + $0x8] sm:$0xff] %v173_v15 }
 0x120   :  { %306 = shalt.err (!%p303_p6)
}
 0x121   :  { %s307_s15 = scalar_lea.hbm %s394_s3, 256 }
 0x122   :  { %p308_p7 = scmp.ne.s32.totalorder %s394_s3, %s307_s15  ;;  %p311_p8 = scmp.lt.u32.totalorder %s307_s15, %s394_s3 }
 0x124   :  { %p313_p9 = pnand %p311_p8, %p308_p7 }
 0x126   :  { %316 = shalt.err (!%p313_p9)
}
 0x127   :  { %s330_s20 = smov 128   ;;  %s331_s21 = smov 8  }
 0x128   :  { %187 = dma.vmem_to_hbm [thread:$0]  %s182_s12, 256, %s394_s3, [#allocation4], %s330_s20, %s330_s20, %s331_s21  }
 0x129   :  { %321 = dma.done.wait [#allocation4], 256  }
 0x12a   :  { %322 = vsyncadd [#allocation4], 4294967040 }
 0x12b   :  { %191 = vsyncpa [#allocation3], 1 }
 0x12c   :  { %192 = vsyncpa [#allocation6], 1 }
 0x12d   :  { %193 = vsyncpa [#allocation4], 1 }

</bundles_post_ra>
